<compile_context>
chip_gen: v7x
topology: tpu7x:2x2x1
jax: 0.10.0
libtpu: 0.0.40
codegen_flags: <defaults>
</compile_context>

<pallas_src>
import jax
import jax.numpy as jnp
from jax.experimental import pallas as pl
from jax.experimental.pallas import tpu as pltpu


def _round_up(x, m):
    return (x + m - 1) // m * m


def _vmem_capacity_bytes():
    try:
        cap = int(getattr(pltpu.get_tpu_info(), "vmem_capacity_bytes"))
        if cap > 0:
            return cap
    except Exception:
        pass
    return 64 << 20  # conservative: v7x physical VMEM


# ---------------------------------------------------------------------------
# Fused single pass: logits written into a VMEM-resident (tb, V_pad) stripe,
# online logsumexp in scratch, in-place normalization at the last vocab tile.
# ---------------------------------------------------------------------------
def _fused_logsoftmax_kernel(x_ref, w_ref, b_ref, out_ref, m_sc, l_sc):
    # x_ref: (tb, D) bf16   w_ref: (D, tv) bf16   b_ref: (1, tv) f32
    # out_ref: (tb, V_pad) f32 (resident across the vocab grid axis)
    j = pl.program_id(1)
    tv = w_ref.shape[1]

    @pl.when(j == 0)
    def _():
        m_sc[...] = jnp.full(m_sc.shape, -jnp.inf, dtype=m_sc.dtype)
        l_sc[...] = jnp.zeros(l_sc.shape, dtype=l_sc.dtype)

    # (tb, D) x (D, tv) -> (tb, tv), f32 accumulation on the MXU.
    logits = jnp.dot(x_ref[...], w_ref[...],
                     preferred_element_type=jnp.float32) + b_ref[...]

    col = pl.multiple_of(j * tv, 128)
    out_ref[:, pl.ds(col, tv)] = logits

    # Online max / logsumexp over the vocab tiles (f32 throughout).
    tile_max = jnp.max(logits, axis=-1, keepdims=True)
    m_new = jnp.maximum(m_sc[...], tile_max)
    l_sc[...] = l_sc[...] * jnp.exp(m_sc[...] - m_new) + jnp.sum(
        jnp.exp(logits - m_new), axis=-1, keepdims=True)
    m_sc[...] = m_new

    @pl.when(j == pl.num_programs(1) - 1)
    def _():
        lse = m_sc[...] + jnp.log(l_sc[...])
        out_ref[...] = out_ref[...] - lse


# ---------------------------------------------------------------------------
# Fallback pass 1 (huge vocab): tiled logits + per-row logsumexp.
# ---------------------------------------------------------------------------
def _logits_lse_kernel(x_ref, w_ref, b_ref, logits_ref, lse_ref, m_sc, l_sc):
    j = pl.program_id(1)

    @pl.when(j == 0)
    def _():
        m_sc[...] = jnp.full(m_sc.shape, -jnp.inf, dtype=m_sc.dtype)
        l_sc[...] = jnp.zeros(l_sc.shape, dtype=l_sc.dtype)

    logits = jnp.dot(x_ref[...], w_ref[...],
                     preferred_element_type=jnp.float32) + b_ref[...]
    logits_ref[...] = logits

    tile_max = jnp.max(logits, axis=-1, keepdims=True)
    m_new = jnp.maximum(m_sc[...], tile_max)
    l_sc[...] = l_sc[...] * jnp.exp(m_sc[...] - m_new) + jnp.sum(
        jnp.exp(logits - m_new), axis=-1, keepdims=True)
    m_sc[...] = m_new

    @pl.when(j == pl.num_programs(1) - 1)
    def _():
        lse_ref[...] = m_sc[...] + jnp.log(l_sc[...])


# ---------------------------------------------------------------------------
# Fallback pass 2: out = logits - lse (elementwise, lane-dense, in place).
# ---------------------------------------------------------------------------
def _normalize_kernel(logits_ref, lse_ref, out_ref):
    out_ref[...] = logits_ref[...] - lse_ref[...]


def make_generator(weight, bias):
    """One-time prep. Returns forward(x) = log_softmax(x @ weight.T + bias, axis=1).

    weight: (V, D) float (PyTorch nn.Linear layout); bias: (V,).
    """
    V, D = weight.shape
    assert bias.shape == (V,)

    cap = _vmem_capacity_bytes()
    budget = int(cap * 0.70)

    # ---- vocab tile (chosen once; the stored weight layout depends on it) --
    v128 = _round_up(V, 128)
    # per-column cost: weight tile (bf16, double-buffered) + bias tile (f32)
    # + in-kernel f32 temporaries (logits value + exp), assuming tb <= 256.
    per_col = 2 * D * 2 + 2 * 4 + 2 * 256 * 4
    tv = (max(budget // 3, 1 << 20) // per_col) // 128 * 128
    tv = max(128, min(tv, v128, 2048))
    # padding < tv  =>  the last vocab tile always contains >= 1 real column,
    # which the -1e30 padded-bias trick relies on.
    v_pad = _round_up(V, tv)
    n_vt = v_pad // tv

    # ---- one-time weight / bias prep (no per-call cast/pad of the weight) --
    w_t = jnp.pad(weight.astype(jnp.bfloat16), ((0, v_pad - V), (0, 0))).T   # (D, V_pad)
    b_row = jnp.pad(bias.astype(jnp.float32), (0, v_pad - V),
                    constant_values=-1e30).reshape(1, v_pad)

    def forward(x):
        B, D2 = x.shape
        assert D2 == D, "d_model mismatch"
        b8 = _round_up(max(B, 8), 8)

        def balanced_tb(cap_rows):
            # Balanced row tiles: avoid near-doubling the row count when B is
            # just above a tile boundary.
            cap_rows = max(8, min(cap_rows, b8))
            n = pl.cdiv(b8, cap_rows)
            t = _round_up(pl.cdiv(b8, n), 8)
            return t, t * n, n

        x_p = x.astype(jnp.bfloat16)

        # ---- fused single pass if the (tb, V_pad) f32 stripe fits VMEM -----
        tb_fit = ((budget // 2) // (2 * v_pad * 4)) // 8 * 8
        if tb_fit >= 8:
            tb, b_pad, n_rt = balanced_tb(min(256, tb_fit))
            if b_pad != B:
                x_p = jnp.pad(x_p, ((0, b_pad - B), (0, 0)))
            working = (2 * tb * v_pad * 4      # resident out stripe (double-buffered)
                       + 2 * tb * D * 2        # x tile (bf16, db)
                       + 2 * D * tv * 2        # weight tile (bf16, db)
                       + 2 * tv * 4            # bias tile (f32, db)
                       + 2 * tb * 128 * 4      # m / l scratch (lane-padded)
                       + 2 * tb * tv * 4)      # in-kernel f32 temporaries
            vmem_limit = int(min(cap - (4 << 20),
                                 max(working + (4 << 20), 16 << 20)))
            out = pl.pallas_call(
                _fused_logsoftmax_kernel,
                out_shape=jax.ShapeDtypeStruct((b_pad, v_pad), jnp.float32),
                grid=(n_rt, n_vt),
                in_specs=[
                    pl.BlockSpec((tb, D), lambda i, j: (i, 0)),
                    pl.BlockSpec((D, tv), lambda i, j: (0, j)),
                    pl.BlockSpec((1, tv), lambda i, j: (0, j)),
                ],
                out_specs=pl.BlockSpec((tb, v_pad), lambda i, j: (i, 0)),
                scratch_shapes=[pltpu.VMEM((tb, 1), jnp.float32),   # running max
                                pltpu.VMEM((tb, 1), jnp.float32)],  # running sum-exp
                compiler_params=pltpu.CompilerParams(
                    dimension_semantics=("parallel", "arbitrary"),
                    vmem_limit_bytes=vmem_limit),
            )(x_p, w_t, b_row)
            return out[:B, :V]

        # ---- fallback: vocab stripe too big for VMEM -> two passes ---------
        tb, b_pad, n_rt = balanced_tb(256)
        if b_pad != B:
            x_p = jnp.pad(x_p, ((0, b_pad - B), (0, 0)))
        working1 = (2 * tb * D * 2 + 2 * D * tv * 2 + 2 * tv * 4
                    + 4 * tb * tv * 4 + 4 * tb * 128 * 4)
        vmem_limit = int(min(cap - (4 << 20),
                             max(working1 + (8 << 20), 32 << 20)))
        logits, lse = pl.pallas_call(
            _logits_lse_kernel,
            out_shape=(jax.ShapeDtypeStruct((b_pad, v_pad), jnp.float32),
                       jax.ShapeDtypeStruct((b_pad, 1), jnp.float32)),
            grid=(n_rt, n_vt),
            in_specs=[
                pl.BlockSpec((tb, D), lambda i, j: (i, 0)),
                pl.BlockSpec((D, tv), lambda i, j: (0, j)),
                pl.BlockSpec((1, tv), lambda i, j: (0, j)),
            ],
            out_specs=(pl.BlockSpec((tb, tv), lambda i, j: (i, j)),
                       pl.BlockSpec((tb, 1), lambda i, j: (i, 0))),
            scratch_shapes=[pltpu.VMEM((tb, 1), jnp.float32),
                            pltpu.VMEM((tb, 1), jnp.float32)],
            compiler_params=pltpu.CompilerParams(
                dimension_semantics=("parallel", "arbitrary"),
                vmem_limit_bytes=vmem_limit),
        )(x_p, w_t, b_row)

        # Pass 2: HBM-bound normalize with large lane-dense tiles; logits
        # aliased in place (no second (B, V) allocation).
        tv2 = tv
        for m in range(min(v_pad, 4096) // tv, 0, -1):
            if v_pad % (m * tv) == 0:
                tv2 = m * tv
                break
        out = pl.pallas_call(
            _normalize_kernel,
            out_shape=jax.ShapeDtypeStruct((b_pad, v_pad), jnp.float32),
            grid=(n_rt, v_pad // tv2),
            in_specs=[pl.BlockSpec((tb, tv2), lambda i, j: (i, j)),
                      pl.BlockSpec((tb, 1), lambda i, j: (i, 0))],
            out_specs=pl.BlockSpec((tb, tv2), lambda i, j: (i, j)),
            input_output_aliases={0: 0},
            compiler_params=pltpu.CompilerParams(
                dimension_semantics=("parallel", "arbitrary"),
                vmem_limit_bytes=vmem_limit),
        )(logits, lse)
        return out[:B, :V]

    return forward


if __name__ == "__main__":
    # Small shapes consistent with the module: batch=8, d_model=32, vocab=128.
    B, D, V = 8, 32, 128

    key = jax.random.PRNGKey(0)
    kx, kw, kb = jax.random.split(key, 3)

    x = jax.random.normal(kx, (B, D), dtype=jnp.float32)
    weight = jax.random.normal(kw, (V, D), dtype=jnp.float32) * 0.05  # (vocab, d_model)
    bias = jax.random.normal(kb, (V,), dtype=jnp.float32) * 0.01

    forward = make_generator(weight, bias)      # one-time weight prep
    out = jax.block_until_ready(forward(x))

    # Reference in plain JAX, using the same bf16-rounded matmul operands the
    # kernel feeds to the MXU (accumulation is f32 in both).
    x_bf = x.astype(jnp.bfloat16).astype(jnp.float32)
    w_bf = weight.astype(jnp.bfloat16).astype(jnp.float32)
    ref = jax.nn.log_softmax(x_bf @ w_bf.T + bias, axis=1)

    assert out.shape == (B, V)
    assert jnp.allclose(out, ref, atol=2e-3, rtol=2e-3), "mismatch vs reference"

    print("KERNEL_OK")
</pallas_src>

<mosaic_0001>
module attributes {stable_mosaic.version = 11 : i64} {
  func.func @_fused_logsoftmax_kernel(%arg0: i32, %arg1: i32, %arg2: memref<8x32xbf16, #tpu.memory_space<vmem>>, %arg3: memref<32x128xbf16, #tpu.memory_space<vmem>>, %arg4: memref<1x128xf32, #tpu.memory_space<vmem>>, %arg5: memref<8x128xf32, #tpu.memory_space<vmem>>, %arg6: memref<8x1xf32, #tpu.memory_space<vmem>>, %arg7: memref<8x1xf32, #tpu.memory_space<vmem>>) attributes {dimension_semantics = [#tpu.dimension_semantics<parallel>, #tpu.dimension_semantics<arbitrary>], iteration_bounds = array<i64: 1, 1>, scalar_prefetch = 0 : i64, scratch_operands = 2 : i64, tpu.core_type = #tpu.core_type<tc>, window_params = [{transform_indices = @transform_0, window_bounds = array<i64: 8, 32>}, {transform_indices = @transform_1, window_bounds = array<i64: 32, 128>}, {transform_indices = @transform_2, window_bounds = array<i64: 1, 128>}, {transform_indices = @transform_3, window_bounds = array<i64: 8, 128>}]} {
    %c0_i32 = arith.constant 0 : i32
    %0 = arith.cmpi eq, %arg1, %c0_i32 : i32
    %1 = arith.extui %0 : i1 to i32
    %c0_i32_0 = arith.constant 0 : i32
    %2 = arith.cmpi ne, %1, %c0_i32_0 : i32
    scf.if %2 {
      %cst_21 = arith.constant 0xFF800000 : f32
      %33 = vector.broadcast %cst_21 : f32 to vector<8x1xf32>
      %c0_22 = arith.constant 0 : index
      %c0_23 = arith.constant 0 : index
      %34 = vector.load %arg6[%c0_22, %c0_23] : memref<8x1xf32, #tpu.memory_space<vmem>>, vector<8x1xf32>
      tpu.vector_store %arg6[%c0_22, %c0_23], %33 {strides = array<i32>} : memref<8x1xf32, #tpu.memory_space<vmem>>, vector<8x1xf32>,
      %cst_24 = arith.constant 0.000000e+00 : f32
      %35 = vector.broadcast %cst_24 : f32 to vector<8x1xf32>
      %c0_25 = arith.constant 0 : index
      %c0_26 = arith.constant 0 : index
      %36 = vector.load %arg7[%c0_25, %c0_26] : memref<8x1xf32, #tpu.memory_space<vmem>>, vector<8x1xf32>
      tpu.vector_store %arg7[%c0_25, %c0_26], %35 {strides = array<i32>} : memref<8x1xf32, #tpu.memory_space<vmem>>, vector<8x1xf32>,
    } else {
    }
    %c0 = arith.constant 0 : index
    %c0_1 = arith.constant 0 : index
    %3 = vector.load %arg2[%c0, %c0_1] : memref<8x32xbf16, #tpu.memory_space<vmem>>, vector<8x32xbf16>
    %c0_2 = arith.constant 0 : index
    %c0_3 = arith.constant 0 : index
    %4 = vector.load %arg3[%c0_2, %c0_3] : memref<32x128xbf16, #tpu.memory_space<vmem>>, vector<32x128xbf16>
    %cst = arith.constant dense<0.000000e+00> : vector<8x128xf32>
    %5 = tpu.matmul %3, %4, %cst {dimension_numbers = #tpu.dot_dimension_numbers<[1], [0], [0], [1], [0, 0, 1, 1], [], []>} : vector<8x32xbf16>, vector<32x128xbf16>, vector<8x128xf32> -> vector<8x128xf32>
    %c0_4 = arith.constant 0 : index
    %c0_5 = arith.constant 0 : index
    %6 = vector.load %arg4[%c0_4, %c0_5] : memref<1x128xf32, #tpu.memory_space<vmem>>, vector<1x128xf32>
    %7 = vector.broadcast %6 : vector<1x128xf32> to vector<8x128xf32>
    %8 = arith.addf %5, %7 : vector<8x128xf32>
    %c128_i32 = arith.constant 128 : i32
    %9 = arith.muli %arg1, %c128_i32 : i32
    %10 = tpu.assume_multiple %9, 128 : i32
    %c0_6 = arith.constant 0 : index
    %11 = arith.index_cast %10 : i32 to index
    %12 = vector.load %arg5[%c0_6, %11] : memref<8x128xf32, #tpu.memory_space<vmem>>, vector<8x128xf32>
    tpu.vector_store %arg5[%c0_6, %11], %8 {strides = array<i32>} : memref<8x128xf32, #tpu.memory_space<vmem>>, vector<8x128xf32>,
    %cst_7 = arith.constant dense<0xFF800000> : vector<8xf32>
    %13 = vector.multi_reduction <maximumf>, %8, %cst_7 [1] : vector<8x128xf32> to vector<8xf32>
    %14 = vector.shape_cast %13 : vector<8xf32> to vector<8x1xf32>
    %c0_8 = arith.constant 0 : index
    %c0_9 = arith.constant 0 : index
    %15 = vector.load %arg6[%c0_8, %c0_9] : memref<8x1xf32, #tpu.memory_space<vmem>>, vector<8x1xf32>
    %16 = arith.maximumf %15, %14 : vector<8x1xf32>
    %c0_10 = arith.constant 0 : index
    %c0_11 = arith.constant 0 : index
    %17 = vector.load %arg7[%c0_10, %c0_11] : memref<8x1xf32, #tpu.memory_space<vmem>>, vector<8x1xf32>
    %c0_12 = arith.constant 0 : index
    %c0_13 = arith.constant 0 : index
    %18 = vector.load %arg6[%c0_12, %c0_13] : memref<8x1xf32, #tpu.memory_space<vmem>>, vector<8x1xf32>
    %19 = arith.subf %18, %16 : vector<8x1xf32>
    %20 = math.exp %19 : vector<8x1xf32>
    %21 = arith.mulf %17, %20 : vector<8x1xf32>
    %22 = vector.broadcast %16 : vector<8x1xf32> to vector<8x128xf32>
    %23 = arith.subf %8, %22 : vector<8x128xf32>
    %24 = math.exp %23 : vector<8x128xf32>
    %cst_14 = arith.constant dense<0.000000e+00> : vector<8xf32>
    %25 = vector.multi_reduction <add>, %24, %cst_14 [1] : vector<8x128xf32> to vector<8xf32>
    %26 = vector.shape_cast %25 : vector<8xf32> to vector<8x1xf32>
    %27 = arith.addf %21, %26 : vector<8x1xf32>
    %c0_15 = arith.constant 0 : index
    %c0_16 = arith.constant 0 : index
    %28 = vector.load %arg7[%c0_15, %c0_16] : memref<8x1xf32, #tpu.memory_space<vmem>>, vector<8x1xf32>
    tpu.vector_store %arg7[%c0_15, %c0_16], %27 {strides = array<i32>} : memref<8x1xf32, #tpu.memory_space<vmem>>, vector<8x1xf32>,
    %c0_17 = arith.constant 0 : index
    %c0_18 = arith.constant 0 : index
    %29 = vector.load %arg6[%c0_17, %c0_18] : memref<8x1xf32, #tpu.memory_space<vmem>>, vector<8x1xf32>
    tpu.vector_store %arg6[%c0_17, %c0_18], %16 {strides = array<i32>} : memref<8x1xf32, #tpu.memory_space<vmem>>, vector<8x1xf32>,
    %c0_i32_19 = arith.constant 0 : i32
    %30 = arith.cmpi eq, %arg1, %c0_i32_19 : i32
    %31 = arith.extui %30 : i1 to i32
    %c0_i32_20 = arith.constant 0 : i32
    %32 = arith.cmpi ne, %31, %c0_i32_20 : i32
    scf.if %32 {
      %c0_21 = arith.constant 0 : index
      %c0_22 = arith.constant 0 : index
      %33 = vector.load %arg6[%c0_21, %c0_22] : memref<8x1xf32, #tpu.memory_space<vmem>>, vector<8x1xf32>
      %c0_23 = arith.constant 0 : index
      %c0_24 = arith.constant 0 : index
      %34 = vector.load %arg7[%c0_23, %c0_24] : memref<8x1xf32, #tpu.memory_space<vmem>>, vector<8x1xf32>
      %35 = math.log %34 : vector<8x1xf32>
      %36 = arith.addf %33, %35 : vector<8x1xf32>
      %c0_25 = arith.constant 0 : index
      %c0_26 = arith.constant 0 : index
      %37 = vector.load %arg5[%c0_25, %c0_26] : memref<8x128xf32, #tpu.memory_space<vmem>>, vector<8x128xf32>
      %38 = vector.broadcast %36 : vector<8x1xf32> to vector<8x128xf32>
      %39 = arith.subf %37, %38 : vector<8x128xf32>
      %c0_27 = arith.constant 0 : index
      %c0_28 = arith.constant 0 : index
      %40 = vector.load %arg5[%c0_27, %c0_28] : memref<8x128xf32, #tpu.memory_space<vmem>>, vector<8x128xf32>
      tpu.vector_store %arg5[%c0_27, %c0_28], %39 {strides = array<i32>} : memref<8x128xf32, #tpu.memory_space<vmem>>, vector<8x128xf32>,
    } else {
    }
    return
  }
  func.func @transform_0(%arg0: i32, %arg1: i32) -> (i32, i32) {
    %c0_i32 = arith.constant 0 : i32
    %c0_i32_0 = arith.constant 0 : i32
    return %arg0, %c0_i32 : i32, i32
  }
  func.func @transform_1(%arg0: i32, %arg1: i32) -> (i32, i32) {
    %c0_i32 = arith.constant 0 : i32
    %c0_i32_0 = arith.constant 0 : i32
    return %c0_i32, %arg1 : i32, i32
  }
  func.func @transform_2(%arg0: i32, %arg1: i32) -> (i32, i32) {
    %c0_i32 = arith.constant 0 : i32
    %c0_i32_0 = arith.constant 0 : i32
    return %c0_i32, %arg1 : i32, i32
  }
  func.func @transform_3(%arg0: i32, %arg1: i32) -> (i32, i32) {
    %c0_i32 = arith.constant 0 : i32
    %c0_i32_0 = arith.constant 0 : i32
    return %arg0, %c0_i32 : i32, i32
  }
}

</mosaic_0001>

<bundles_post_ra>
// kernel: tpu_custom_call.1
= control target key start
LH: loop header
LB: loop body
LE: loop exit
PB: predicated region body
PF: predicated region fallthrough
CT: control target
= control target key end

     0   :  { %8 = vsyncpa [#allocation5], 0  ;;  %s363_s0 = inlined_call_operand.hbm [shape: bf16[8,32], index: 0, kind: input, shape index: {}]   ;;  %s364_s1 = inlined_call_operand.hbm [shape: bf16[32,128], index: 1, kind: input, shape index: {}]   ;;  %s365_s2 = inlined_call_operand.vmem [shape: f32[1,128], index: 2, kind: input, shape index: {}]   ;;  %s366_s3 = inlined_call_operand.hbm [shape: f32[8,128], index: 3, kind: output, shape index: {}]  }
   0x1   :  { %9 = vsyncpa [#allocation8], 0 }
   0x2   :  { %10 = vsyncpa [#allocation6], 0  ;;  %s284_s12 = smov [#allocation4]   ;;  %s285_s14 = smov [#allocation7]  }
   0x3   :  { %s17_s13 = sshll.u32 %s284_s12, 4  ;;  %s26_s15 = sshll.u32 %s285_s14, 4  ;;  %s18_s13 = int_to_ptr.vmem [resolvable:$true] %s17_s13  ;;  %s313_s15 = int_to_ptr.vmem [resolvable:$true] %s26_s15 }
   0x4   :  { %s212_s18 = scalar_lea.hbm %s363_s0, 64 }
   0x5   :  { %p213_p0 = scmp.ne.s32.totalorder %s363_s0, %s212_s18  ;;  %p216_p1 = scmp.lt.u32.totalorder %s212_s18, %s363_s0 }
   0x7   :  { %p218_p2 = pnand %p216_p1, %p213_p0 }
   0x9   :  { %221 = shalt.err (!%p218_p2)
}
   0xa   :  { %s222_s23 = scalar_lea.vmem %s18_s13, 64  ;;  %p227_p4 = scmp.lt.s32.totalorder %s18_s13, %s18_s13 }
   0xb   :  { %p223_p3 = scmp.ne.s32.totalorder %s18_s13, %s222_s23  ;;  %p228_p5 = scmp.lt.s32.totalorder %s222_s23, %s222_s23 }
   0xd   :  { %p229_p6 = por %p228_p5, %p227_p4 }
   0xf   :  { %p230_p7 = pnand %p229_p6, %p223_p3 }
  0x11   :  { %233 = shalt.err (!%p230_p7)
}
  0x12   :  { %20 = dma.hbm_to_vmem [thread:$0]  %s363_s0, 64, %s18_s13, [#allocation5]  }
  0x13   :  { %s234_s28 = scalar_lea.hbm %s364_s1, 256 }
  0x14   :  { %p235_p8 = scmp.ne.s32.totalorder %s364_s1, %s234_s28  ;;  %p238_p9 = scmp.lt.u32.totalorder %s234_s28, %s364_s1 }
  0x16   :  { %p240_p10 = pnand %p238_p9, %p235_p8 }
  0x18   :  { %243 = shalt.err (!%p240_p10)
}
  0x19   :  { %s244_s6 = scalar_lea.vmem %s313_s15, 256  ;;  %p249_p12 = scmp.lt.s32.totalorder %s313_s15, %s313_s15 }
  0x1a   :  { %p245_p11 = scmp.ne.s32.totalorder %s313_s15, %s244_s6  ;;  %p250_p13 = scmp.lt.s32.totalorder %s244_s6, %s244_s6 }
  0x1c   :  { %p251_p0 = por %p250_p13, %p249_p12 }
  0x1e   :  { %p252_p1 = pnand %p251_p0, %p245_p11 }
  0x20   :  { %255 = shalt.err (!%p252_p1)
}
  0x21   :  { %s286_s0 = smov 64   ;;  %s287_s7 = smov 4  }
  0x22   :  { %32 = dma.hbm_to_vmem [thread:$0]  %s364_s1, 256, %s313_s15, [#allocation8], %s286_s0, %s286_s0, %s287_s7  }
  0x23   :  { %278 = dma.done.wait [#allocation5], 64  }
  0x24   :  { %279 = vsyncadd [#allocation5], 4294967232 }
  0x25   :  { %280 = dma.done.wait [#allocation8], 256  }
  0x26   :  { %281 = vsyncadd [#allocation8], 4294967040  ;;  %vm46_vm0 = vcmask 7168   ;;  %v288_v0 = vmov 0.0   ;;  %vm289_vm1 = vmmov 0   ;;  %v204_v1 = vld [vmem:[#allocation7] sm:$0xff]  }
  0x27   :  { %48 = vst.msk [vmem:[#allocation3] sm:$0xff] %vm46_vm0, %v288_v0  ;;  %185 = vmatprep.subr.bf16.mxu0 %v288_v0  ;;  %189 = vmatprep.mubr.msk.bf16.mxu0 %vm289_vm1, %v288_v0  ;;  %v205_v2 = vld [vmem:[#allocation7 + $0x8] sm:$0xff]   ;;  %v49_v3 = vld [vmem:[#allocation4] sm:$0xf]  ;;  %vm73_vm2 = vcmask 261120   ;;  %v290_v4 = vmov -inf  }
  0x28   :  { %186 = vmatpush3.bf16.msra.mxu0 %v204_v1  ;;  %47 = vst.msk [vmem:[#allocation2] sm:$0xff] %vm46_vm0, %v290_v4  ;;  %v178_v5 = vld [vmem:[%s365_s2] ss:$0 sm:$0xff]  ;;  %v291_v11 = vmov 0   ;;  %s292_s2 = smov [#allocation9]  }
  0x29   :  { %187 = vmatprep.subr.bf16.mxu0 %v288_v0  ;;  %202 = vset.pattern.permute.xlu0 %v291_v11  ;;  %s167_s11 = sshll.u32 %s292_s2, 4  ;;  %s168_s11 = int_to_ptr.vmem [resolvable:$true] %s167_s11 }
  0x2a   :  { %203 = vset.pattern.permute.xlu1 %v291_v11  ;;  %s256_s12 = scalar_lea.vmem %s168_s11, 128  ;;  %p261_p3 = scmp.lt.s32.totalorder %s168_s11, %s168_s11 }
  0x2b   :  { %p257_p2 = scmp.ne.s32.totalorder %s168_s11, %s256_s12  ;;  %p262_p4 = scmp.lt.s32.totalorder %s256_s12, %s256_s12 }
  0x2c   :  { %188 = vmatpush3.bf16.msra.mxu0 %v205_v2 }
  0x2d   :  { %p263_p5 = por %p262_p4, %p261_p3 }
  0x2e   :  { %v126_v22 = vld [vmem:[#allocation3] sm:$0xff] }
  0x2f   :  { %190 = vmatmul.mubr.msk.bf16.vlgmr.msra.gmra.mrb[0].mxu0 %vm73_vm2, %v49_v3  ;;  %v124_v12 = vld [vmem:[#allocation2] sm:$0xff]  ;;  %p264_p6 = pnand %p263_p5, %p257_p2 }
 0x102   :  { %v111_v6 = vpop.f32.mrb[0].mxu0 }
 0x103   :  { %v112_v7 = vadd.f32 %v178_v5, %v111_v6  ;;  %v191_v8 = vpop.f32.mrb[1].mxu0 }
 0x104   :  { %v114_v9 = vpop.f32.mrb[2].mxu0 }
 0x105   :  { %122 = vmax.xlane.f32.xlu0 %v112_v7  ;;  %v192_v10 = vpop.f32.mrb[3].mxu0 }
 0x192   :  { %v123_v13 = vpop.xlane.xlu0 %122 }
 0x193   :  { %v125_v14 = vmax.f32 %v124_v12, %v123_v13 }
 0x195   :  { %v127_v15 = vsub.f32 %v124_v12, %v125_v14  ;;  %144 = vst.msk [vmem:[#allocation2] sm:$0xff] %vm46_vm0, %v125_v14  ;;  %133 = vperm.xlu0 %202, %v125_v14  }
 0x197   :  { %v128_v20 = vmul.f32 1.442695, %v127_v15 }
 0x19c   :  { %v148_v29 = vld [vmem:[#allocation2] sm:$0xff] }
 0x214   :  { %v134_v16 = vpop.permute.xlu0 %133 }
 0x215   :  { %v136_v17 = vsub.f32 %v112_v7, %v134_v16 }
 0x217   :  { %v137_v18 = vmul.f32 1.442695, %v136_v17 }
 0x219   :  { %206 = vpow2.f32 %v137_v18 }
 0x21a   :  { %208 = vpow2.f32 %v128_v20 }
 0x223   :  { %v207_v19 = vpop.eup %206 }
 0x224   :  { %139 = vadd.xlane.f32.xlu1 %v207_v19  ;;  %v209_v21 = vpop.eup %208 }
 0x225   :  { %v130_v23 = vmul.f32 %v209_v21, %v126_v22 }
 0x2b1   :  { %v140_v24 = vpop.xlane.xlu1 %139 }
 0x2b2   :  { %v141_v25 = vadd.f32 %v140_v24, %v130_v23 }
 0x2b4   :  { %143 = vst.msk [vmem:[#allocation3] sm:$0xff] %vm46_vm0, %v141_v25 }
 0x2bb   :  { %v149_v26 = vld [vmem:[#allocation3] sm:$0xff] }
 0x2bc   :  { %210 = vlog2.f32 %v149_v26 }
 0x2c6   :  { %v211_v27 = vpop.eup %210 }
 0x2c7   :  { %v151_v28 = vmul.f32 0.6931472, %v211_v27 }
 0x2c9   :  { %v152_v30 = vadd.f32 %v151_v28, %v148_v29 }
 0x2cb   :  { %156 = vperm.xlu1 %203, %v152_v30  }
 0x34a   :  { %v157_v31 = vpop.permute.xlu1 %156 }
 0x34b   :  { %v159_v32 = vsub.f32 %v112_v7, %v157_v31 }
 0x34d   :  { %160 = vst [vmem:[#allocation9] sm:$0xff] %v159_v32 }
 0x34e   :  { %267 = shalt.err (!%p264_p6)
}
 0x34f   :  { %s268_s15 = scalar_lea.hbm %s366_s3, 128 }
 0x350   :  { %p269_p7 = scmp.ne.s32.totalorder %s366_s3, %s268_s15  ;;  %p272_p8 = scmp.lt.u32.totalorder %s268_s15, %s366_s3 }
 0x352   :  { %p274_p9 = pnand %p272_p8, %p269_p7 }
 0x354   :  { %277 = shalt.err (!%p274_p9)
}
 0x355   :  { %170 = dma.vmem_to_hbm [thread:$0]  %s168_s11, 128, %s366_s3, [#allocation6]  }
 0x356   :  { %282 = dma.done.wait [#allocation6], 128  }
 0x357   :  { %283 = vsyncadd [#allocation6], 4294967168 }
 0x358   :  { %174 = vsyncpa [#allocation5], 1 }
 0x359   :  { %175 = vsyncpa [#allocation8], 1 }
 0x35a   :  { %176 = vsyncpa [#allocation6], 1 }

</bundles_post_ra>
